<compile_context>
chip_gen: v5e
topology: v5e:2x2
jax: 0.10.0
libtpu: 0.0.40
codegen_flags: <defaults>
</compile_context>

<pallas_src>
import jax
import jax.numpy as jnp
from jax.experimental import pallas as pl
from jax.experimental.pallas import tpu as pltpu

_LN_EPS = 1e-5  # PyTorch F.layer_norm default


def _round_up(v, m):
    return ((v + m - 1) // m) * m


def _ln_two_pass(x):
    """Classic two-pass LayerNorm (robust on raw, possibly large-mean inputs)."""
    mu = jnp.mean(x, axis=-1, keepdims=True)
    xc = x - mu
    var = jnp.mean(xc * xc, axis=-1, keepdims=True)
    return xc * jax.lax.rsqrt(var + _LN_EPS)


def _ln_one_pass(x):
    """Fused one-pass LayerNorm: independent sum(x) / sum(x*x) reductions."""
    d = x.shape[-1]
    inv_d = 1.0 / d
    s1 = jnp.sum(x, axis=-1, keepdims=True)
    s2 = jnp.sum(x * x, axis=-1, keepdims=True)
    mu = s1 * inv_d
    var = jnp.maximum(s2 * inv_d - mu * mu, 0.0)  # guard tiny negatives
    return (x - mu) * jax.lax.rsqrt(var + _LN_EPS)


def actor_kernel(x_ref, w1_ref, b1_ref, w2_ref, b2_ref, w3t_ref, b3t_ref,
                 mean_t_ref):
    x = x_ref[...].astype(jnp.float32)

    # trick['feature_norm'] — two-pass form on the raw observations.
    x = _ln_two_pass(x)

    # l1 + relu + LayerNorm  (bf16 MXU inputs, f32 accumulate)
    h = jnp.dot(x.astype(jnp.bfloat16), w1_ref[...].astype(jnp.bfloat16),
                preferred_element_type=jnp.float32) + b1_ref[...]
    h = jnp.maximum(h, 0.0)
    h = _ln_one_pass(h)

    # l2 + relu + LayerNorm
    h = jnp.dot(h.astype(jnp.bfloat16), w2_ref[...].astype(jnp.bfloat16),
                preferred_element_type=jnp.float32) + b2_ref[...]
    h = jnp.maximum(h, 0.0)
    h = _ln_one_pass(h)

    # Mean head, produced directly in transposed (action_dim, tb) form:
    #   out[a, b] = sum_k w3t[a, k] * h[b, k]     (q·kᵀ-style matmul)
    # -> lane-dense store along the batch axis, no padded lanes, no explicit
    #    transpose of the activation tile.
    m = jax.lax.dot_general(
        w3t_ref[...].astype(jnp.bfloat16), h.astype(jnp.bfloat16),
        dimension_numbers=(((1,), (1,)), ((), ())),
        preferred_element_type=jnp.float32)
    m = jnp.tanh(m + b3t_ref[...])
    mean_t_ref[...] = m.astype(mean_t_ref.dtype)


def actor_forward(x, params, *, tb=None):
    """x: [B, obs_dim] float32.

    params: dict with w1 [obs,h1], b1 [1,h1], w2 [h1,h2], b2 [1,h2],
            w3t [action_dim,h2] (pre-transposed), b3t [action_dim,1],
            log_std [1,action_dim].
    Returns (mean [B, action_dim], std [B, action_dim]).
    """
    B, obs_dim = x.shape
    h1 = params["w1"].shape[1]
    h2 = params["w2"].shape[1]
    action_dim = params["w3t"].shape[0]

    # ---- batch tiling --------------------------------------------------------
    # tb must be a multiple of 128 (lane-dense transposed output block) unless
    # it covers the whole batch.  Cap so v7x's two TensorCores each get >= 1
    # grid step; large default tile amortizes the ~0.35us per-step overhead.
    if B <= 128:
        tb = B
    else:
        want = 2048 if tb is None else max(128, _round_up(tb, 128))
        tb = min(want, _round_up((B + 1) // 2, 128))   # >= 2 steps (v7x megacore)
    nb = pl.cdiv(B, tb)

    cost = pl.CostEstimate(
        flops=int(2 * B * (obs_dim * h1 + h1 * h2 + h2 * action_dim)),
        transcendentals=int(B * (3 + action_dim)),   # 3 rsqrt + tanh per row
        bytes_accessed=int(4 * (B * obs_dim + B * action_dim
                                + obs_dim * h1 + h1 * h2 + h2 * action_dim
                                + h1 + h2 + action_dim)),
    )

    mean_t = pl.pallas_call(
        actor_kernel,
        out_shape=jax.ShapeDtypeStruct((action_dim, B), jnp.float32),
        grid=(nb,),
        in_specs=[
            pl.BlockSpec((tb, obs_dim), lambda i: (i, 0)),    # x: tiled over batch
            pl.BlockSpec((obs_dim, h1), lambda i: (0, 0)),    # weights stay VMEM-resident
            pl.BlockSpec((1, h1), lambda i: (0, 0)),
            pl.BlockSpec((h1, h2), lambda i: (0, 0)),
            pl.BlockSpec((1, h2), lambda i: (0, 0)),
            pl.BlockSpec((action_dim, h2), lambda i: (0, 0)),
            pl.BlockSpec((action_dim, 1), lambda i: (0, 0)),
        ],
        out_specs=pl.BlockSpec((action_dim, tb), lambda i: (0, i)),
        compiler_params=pltpu.CompilerParams(
            dimension_semantics=("parallel",)),               # megacore split on v7x
        cost_estimate=cost,
    )(x, params["w1"], params["b1"], params["w2"], params["b2"],
      params["w3t"], params["b3t"])

    mean = mean_t.T                                           # tiny (action_dim, B) transpose
    # std depends only on the parameter, not on x: compute once outside.
    std = jnp.broadcast_to(
        jnp.exp(jnp.clip(params["log_std"], -20.0, 2.0)), mean.shape)
    return mean, std


def init_params(key, obs_dim, action_dim, hidden_1=128, hidden_2=128):
    """Deterministic synthetic init (orthogonal via QR), biases zero.

    Mean-head weight/bias are stored pre-transposed (w3t, b3t) so the forward
    pass needs no per-call reshuffling.
    """
    def ortho(key, shape, gain):
        a = jax.random.normal(key, shape, dtype=jnp.float32)
        q, r = jnp.linalg.qr(a if shape[0] >= shape[1] else a.T)
        q = q * jnp.sign(jnp.diag(r))[None, :]
        if shape[0] < shape[1]:
            q = q.T
        return gain * q[: shape[0], : shape[1]]

    k1, k2, k3 = jax.random.split(key, 3)
    relu_gain = float(jnp.sqrt(2.0))
    # stored as [in, out]  (PyTorch nn.Linear weight is [out, in])
    w3 = ortho(k3, (hidden_2, action_dim), 0.01)
    return {
        "w1": ortho(k1, (obs_dim, hidden_1), relu_gain),
        "b1": jnp.zeros((1, hidden_1), jnp.float32),
        "w2": ortho(k2, (hidden_1, hidden_2), relu_gain),
        "b2": jnp.zeros((1, hidden_2), jnp.float32),
        "w3t": jnp.asarray(w3.T),                       # (action_dim, h2)
        "b3t": jnp.zeros((action_dim, 1), jnp.float32),
        "log_std": jnp.zeros((1, action_dim), jnp.float32),
    }


def actor_forward_ref(x, params, matmul_dtype=jnp.float32):
    """Pure-JAX reference (two-pass LayerNorm, like F.layer_norm).

    matmul_dtype=jnp.bfloat16 mimics the kernel's bf16-input / f32-accumulate
    MXU matmuls for a tight comparison; float32 matches PyTorch numerics.
    """
    def ln(v):
        mu = jnp.mean(v, axis=-1, keepdims=True)
        var = jnp.mean((v - mu) ** 2, axis=-1, keepdims=True)
        return (v - mu) / jnp.sqrt(var + _LN_EPS)

    def mm(a, b):
        return jnp.dot(a.astype(matmul_dtype), b.astype(matmul_dtype),
                       preferred_element_type=jnp.float32)

    w3 = params["w3t"].T
    b3 = params["b3t"].T
    h = ln(x)
    h = ln(jnp.maximum(mm(h, params["w1"]) + params["b1"], 0.0))
    h = ln(jnp.maximum(mm(h, params["w2"]) + params["b2"], 0.0))
    mean = jnp.tanh(mm(h, w3) + b3)
    std = jnp.exp(jnp.clip(params["log_std"], -20.0, 2.0))
    return mean, jnp.broadcast_to(std, mean.shape)


if __name__ == "__main__":
    key = jax.random.PRNGKey(0)
    kx, kp, kx2 = jax.random.split(key, 3)

    obs_dim, action_dim = 32, 8
    hidden_1 = hidden_2 = 128
    params = init_params(kp, obs_dim, action_dim, hidden_1, hidden_2)

    # ---- small batch: single grid step, block dims == full array dims ------
    B = 8
    x = jax.random.normal(kx, (B, obs_dim), dtype=jnp.float32)
    mean, std = actor_forward(x, params)
    jax.block_until_ready((mean, std))

    mean_bf, std_ref = actor_forward_ref(x, params, matmul_dtype=jnp.bfloat16)
    mean_f32, _ = actor_forward_ref(x, params, matmul_dtype=jnp.float32)
    assert mean.shape == (B, action_dim) and std.shape == (B, action_dim)
    assert jnp.allclose(mean, mean_bf, atol=3e-4, rtol=1e-3), "mean vs bf16 ref"
    assert jnp.allclose(mean, mean_f32, atol=5e-3, rtol=0.0), "mean vs f32 ref"
    assert jnp.allclose(std, std_ref, atol=1e-6, rtol=1e-6), "std mismatch"

    # ---- larger non-divisible batch: 2 grid steps, ragged masked last block -
    B2 = 200
    x2 = jax.random.normal(kx2, (B2, obs_dim), dtype=jnp.float32)
    mean2, std2 = actor_forward(x2, params)     # default tb -> 128, nb=2
    jax.block_until_ready((mean2, std2))

    mean2_bf, _ = actor_forward_ref(x2, params, matmul_dtype=jnp.bfloat16)
    mean2_f32, _ = actor_forward_ref(x2, params, matmul_dtype=jnp.float32)
    assert mean2.shape == (B2, action_dim) and std2.shape == (B2, action_dim)
    assert jnp.allclose(mean2, mean2_bf, atol=3e-4, rtol=1e-3), "mean2 vs bf16 ref"
    assert jnp.allclose(mean2, mean2_f32, atol=5e-3, rtol=0.0), "mean2 vs f32 ref"
    assert bool(jnp.all(jnp.isfinite(mean2))), "non-finite mean"

    print("KERNEL_OK")
</pallas_src>

<mosaic_0001>
module attributes {stable_mosaic.version = 11 : i64} {
  func.func @actor_kernel(%arg0: i32, %arg1: memref<8x32xf32, #tpu.memory_space<vmem>>, %arg2: memref<32x128xf32, #tpu.memory_space<vmem>>, %arg3: memref<1x128xf32, #tpu.memory_space<vmem>>, %arg4: memref<128x128xf32, #tpu.memory_space<vmem>>, %arg5: memref<1x128xf32, #tpu.memory_space<vmem>>, %arg6: memref<8x128xf32, #tpu.memory_space<vmem>>, %arg7: memref<8x1xf32, #tpu.memory_space<vmem>>, %arg8: memref<8x8xf32, #tpu.memory_space<vmem>>) attributes {dimension_semantics = [#tpu.dimension_semantics<parallel>], iteration_bounds = array<i64: 1>, scalar_prefetch = 0 : i64, scratch_operands = 0 : i64, tpu.core_type = #tpu.core_type<tc>, window_params = [{transform_indices = @transform_0, window_bounds = array<i64: 8, 32>}, {pipeline_mode = #tpu.pipeline_mode<synchronous>, transform_indices = @transform_1, window_bounds = array<i64: 32, 128>}, {pipeline_mode = #tpu.pipeline_mode<synchronous>, transform_indices = @transform_2, window_bounds = array<i64: 1, 128>}, {pipeline_mode = #tpu.pipeline_mode<synchronous>, transform_indices = @transform_3, window_bounds = array<i64: 128, 128>}, {pipeline_mode = #tpu.pipeline_mode<synchronous>, transform_indices = @transform_4, window_bounds = array<i64: 1, 128>}, {pipeline_mode = #tpu.pipeline_mode<synchronous>, transform_indices = @transform_5, window_bounds = array<i64: 8, 128>}, {pipeline_mode = #tpu.pipeline_mode<synchronous>, transform_indices = @transform_6, window_bounds = array<i64: 8, 1>}, {transform_indices = @transform_7, window_bounds = array<i64: 8, 8>}]} {
    %c0 = arith.constant 0 : index
    %c0_0 = arith.constant 0 : index
    %0 = vector.load %arg1[%c0, %c0_0] : memref<8x32xf32, #tpu.memory_space<vmem>>, vector<8x32xf32>
    %cst = arith.constant dense<0.000000e+00> : vector<8xf32>
    %1 = vector.multi_reduction <add>, %0, %cst [1] : vector<8x32xf32> to vector<8xf32>
    %2 = vector.shape_cast %1 : vector<8xf32> to vector<8x1xf32>
    %cst_1 = arith.constant 3.200000e+01 : f32
    %3 = vector.broadcast %cst_1 : f32 to vector<8x1xf32>
    %4 = arith.divf %2, %3 : vector<8x1xf32>
    %5 = vector.broadcast %4 : vector<8x1xf32> to vector<8x32xf32>
    %6 = arith.subf %0, %5 : vector<8x32xf32>
    %7 = arith.mulf %6, %6 : vector<8x32xf32>
    %cst_2 = arith.constant dense<0.000000e+00> : vector<8xf32>
    %8 = vector.multi_reduction <add>, %7, %cst_2 [1] : vector<8x32xf32> to vector<8xf32>
    %9 = vector.shape_cast %8 : vector<8xf32> to vector<8x1xf32>
    %cst_3 = arith.constant 3.200000e+01 : f32
    %10 = vector.broadcast %cst_3 : f32 to vector<8x1xf32>
    %11 = arith.divf %9, %10 : vector<8x1xf32>
    %cst_4 = arith.constant 9.99999974E-6 : f32
    %12 = vector.broadcast %cst_4 : f32 to vector<8x1xf32>
    %13 = arith.addf %11, %12 : vector<8x1xf32>
    %14 = math.rsqrt %13 : vector<8x1xf32>
    %15 = vector.broadcast %14 : vector<8x1xf32> to vector<8x32xf32>
    %16 = arith.mulf %6, %15 : vector<8x32xf32>
    %17 = arith.truncf %16 : vector<8x32xf32> to vector<8x32xbf16>
    %c0_5 = arith.constant 0 : index
    %c0_6 = arith.constant 0 : index
    %18 = vector.load %arg2[%c0_5, %c0_6] : memref<32x128xf32, #tpu.memory_space<vmem>>, vector<32x128xf32>
    %19 = arith.truncf %18 : vector<32x128xf32> to vector<32x128xbf16>
    %cst_7 = arith.constant dense<0.000000e+00> : vector<8x128xf32>
    %20 = tpu.matmul %17, %19, %cst_7 {dimension_numbers = #tpu.dot_dimension_numbers<[1], [0], [0], [1], [0, 0, 1, 1], [], []>} : vector<8x32xbf16>, vector<32x128xbf16>, vector<8x128xf32> -> vector<8x128xf32>
    %c0_8 = arith.constant 0 : index
    %c0_9 = arith.constant 0 : index
    %21 = vector.load %arg3[%c0_8, %c0_9] : memref<1x128xf32, #tpu.memory_space<vmem>>, vector<1x128xf32>
    %22 = vector.broadcast %21 : vector<1x128xf32> to vector<8x128xf32>
    %23 = arith.addf %20, %22 : vector<8x128xf32>
    %cst_10 = arith.constant 0.000000e+00 : f32
    %24 = vector.broadcast %cst_10 : f32 to vector<8x128xf32>
    %25 = arith.maximumf %23, %24 : vector<8x128xf32>
    %cst_11 = arith.constant dense<0.000000e+00> : vector<8xf32>
    %26 = vector.multi_reduction <add>, %25, %cst_11 [1] : vector<8x128xf32> to vector<8xf32>
    %27 = vector.shape_cast %26 : vector<8xf32> to vector<8x1xf32>
    %28 = arith.mulf %25, %25 : vector<8x128xf32>
    %cst_12 = arith.constant dense<0.000000e+00> : vector<8xf32>
    %29 = vector.multi_reduction <add>, %28, %cst_12 [1] : vector<8x128xf32> to vector<8xf32>
    %30 = vector.shape_cast %29 : vector<8xf32> to vector<8x1xf32>
    %cst_13 = arith.constant 7.812500e-03 : f32
    %31 = vector.broadcast %cst_13 : f32 to vector<8x1xf32>
    %32 = arith.mulf %27, %31 : vector<8x1xf32>
    %cst_14 = arith.constant 7.812500e-03 : f32
    %33 = vector.broadcast %cst_14 : f32 to vector<8x1xf32>
    %34 = arith.mulf %30, %33 : vector<8x1xf32>
    %35 = arith.mulf %32, %32 : vector<8x1xf32>
    %36 = arith.subf %34, %35 : vector<8x1xf32>
    %cst_15 = arith.constant 0.000000e+00 : f32
    %37 = vector.broadcast %cst_15 : f32 to vector<8x1xf32>
    %38 = arith.maximumf %36, %37 : vector<8x1xf32>
    %39 = vector.broadcast %32 : vector<8x1xf32> to vector<8x128xf32>
    %40 = arith.subf %25, %39 : vector<8x128xf32>
    %cst_16 = arith.constant 9.99999974E-6 : f32
    %41 = vector.broadcast %cst_16 : f32 to vector<8x1xf32>
    %42 = arith.addf %38, %41 : vector<8x1xf32>
    %43 = math.rsqrt %42 : vector<8x1xf32>
    %44 = vector.broadcast %43 : vector<8x1xf32> to vector<8x128xf32>
    %45 = arith.mulf %40, %44 : vector<8x128xf32>
    %46 = arith.truncf %45 : vector<8x128xf32> to vector<8x128xbf16>
    %c0_17 = arith.constant 0 : index
    %c0_18 = arith.constant 0 : index
    %47 = vector.load %arg4[%c0_17, %c0_18] : memref<128x128xf32, #tpu.memory_space<vmem>>, vector<128x128xf32>
    %48 = arith.truncf %47 : vector<128x128xf32> to vector<128x128xbf16>
    %cst_19 = arith.constant dense<0.000000e+00> : vector<8x128xf32>
    %49 = tpu.matmul %46, %48, %cst_19 {dimension_numbers = #tpu.dot_dimension_numbers<[1], [0], [0], [1], [0, 0, 1, 1], [], []>} : vector<8x128xbf16>, vector<128x128xbf16>, vector<8x128xf32> -> vector<8x128xf32>
    %c0_20 = arith.constant 0 : index
    %c0_21 = arith.constant 0 : index
    %50 = vector.load %arg5[%c0_20, %c0_21] : memref<1x128xf32, #tpu.memory_space<vmem>>, vector<1x128xf32>
    %51 = vector.broadcast %50 : vector<1x128xf32> to vector<8x128xf32>
    %52 = arith.addf %49, %51 : vector<8x128xf32>
    %cst_22 = arith.constant 0.000000e+00 : f32
    %53 = vector.broadcast %cst_22 : f32 to vector<8x128xf32>
    %54 = arith.maximumf %52, %53 : vector<8x128xf32>
    %cst_23 = arith.constant dense<0.000000e+00> : vector<8xf32>
    %55 = vector.multi_reduction <add>, %54, %cst_23 [1] : vector<8x128xf32> to vector<8xf32>
    %56 = vector.shape_cast %55 : vector<8xf32> to vector<8x1xf32>
    %57 = arith.mulf %54, %54 : vector<8x128xf32>
    %cst_24 = arith.constant dense<0.000000e+00> : vector<8xf32>
    %58 = vector.multi_reduction <add>, %57, %cst_24 [1] : vector<8x128xf32> to vector<8xf32>
    %59 = vector.shape_cast %58 : vector<8xf32> to vector<8x1xf32>
    %cst_25 = arith.constant 7.812500e-03 : f32
    %60 = vector.broadcast %cst_25 : f32 to vector<8x1xf32>
    %61 = arith.mulf %56, %60 : vector<8x1xf32>
    %cst_26 = arith.constant 7.812500e-03 : f32
    %62 = vector.broadcast %cst_26 : f32 to vector<8x1xf32>
    %63 = arith.mulf %59, %62 : vector<8x1xf32>
    %64 = arith.mulf %61, %61 : vector<8x1xf32>
    %65 = arith.subf %63, %64 : vector<8x1xf32>
    %cst_27 = arith.constant 0.000000e+00 : f32
    %66 = vector.broadcast %cst_27 : f32 to vector<8x1xf32>
    %67 = arith.maximumf %65, %66 : vector<8x1xf32>
    %68 = vector.broadcast %61 : vector<8x1xf32> to vector<8x128xf32>
    %69 = arith.subf %54, %68 : vector<8x128xf32>
    %cst_28 = arith.constant 9.99999974E-6 : f32
    %70 = vector.broadcast %cst_28 : f32 to vector<8x1xf32>
    %71 = arith.addf %67, %70 : vector<8x1xf32>
    %72 = math.rsqrt %71 : vector<8x1xf32>
    %73 = vector.broadcast %72 : vector<8x1xf32> to vector<8x128xf32>
    %74 = arith.mulf %69, %73 : vector<8x128xf32>
    %c0_29 = arith.constant 0 : index
    %c0_30 = arith.constant 0 : index
    %75 = vector.load %arg6[%c0_29, %c0_30] : memref<8x128xf32, #tpu.memory_space<vmem>>, vector<8x128xf32>
    %76 = arith.truncf %75 : vector<8x128xf32> to vector<8x128xbf16>
    %77 = arith.truncf %74 : vector<8x128xf32> to vector<8x128xbf16>
    %cst_31 = arith.constant dense<0.000000e+00> : vector<8x8xf32>
    %78 = tpu.matmul %76, %77, %cst_31 {dimension_numbers = #tpu.dot_dimension_numbers<[1], [1], [0], [0], [0, 0, 1, 0], [], []>} : vector<8x128xbf16>, vector<8x128xbf16>, vector<8x8xf32> -> vector<8x8xf32>
    %c0_32 = arith.constant 0 : index
    %c0_33 = arith.constant 0 : index
    %79 = vector.load %arg7[%c0_32, %c0_33] : memref<8x1xf32, #tpu.memory_space<vmem>>, vector<8x1xf32>
    %80 = vector.broadcast %79 : vector<8x1xf32> to vector<8x8xf32>
    %81 = arith.addf %78, %80 : vector<8x8xf32>
    %82 = math.tanh %81 : vector<8x8xf32>
    %c0_34 = arith.constant 0 : index
    %c0_35 = arith.constant 0 : index
    %83 = vector.load %arg8[%c0_34, %c0_35] : memref<8x8xf32, #tpu.memory_space<vmem>>, vector<8x8xf32>
    tpu.vector_store %arg8[%c0_34, %c0_35], %82 {strides = array<i32>} : memref<8x8xf32, #tpu.memory_space<vmem>>, vector<8x8xf32>,
    return
  }
  func.func @transform_0(%arg0: i32) -> (i32, i32) {
    %c0_i32 = arith.constant 0 : i32
    %c0_i32_0 = arith.constant 0 : i32
    return %arg0, %c0_i32 : i32, i32
  }
  func.func @transform_1(%arg0: i32) -> (i32, i32) {
    %c0_i32 = arith.constant 0 : i32
    %c0_i32_0 = arith.constant 0 : i32
    %c0_i32_1 = arith.constant 0 : i32
    return %c0_i32, %c0_i32_0 : i32, i32
  }
  func.func @transform_2(%arg0: i32) -> (i32, i32) {
    %c0_i32 = arith.constant 0 : i32
    %c0_i32_0 = arith.constant 0 : i32
    %c0_i32_1 = arith.constant 0 : i32
    return %c0_i32, %c0_i32_0 : i32, i32
  }
  func.func @transform_3(%arg0: i32) -> (i32, i32) {
    %c0_i32 = arith.constant 0 : i32
    %c0_i32_0 = arith.constant 0 : i32
    %c0_i32_1 = arith.constant 0 : i32
    return %c0_i32, %c0_i32_0 : i32, i32
  }
  func.func @transform_4(%arg0: i32) -> (i32, i32) {
    %c0_i32 = arith.constant 0 : i32
    %c0_i32_0 = arith.constant 0 : i32
    %c0_i32_1 = arith.constant 0 : i32
    return %c0_i32, %c0_i32_0 : i32, i32
  }
  func.func @transform_5(%arg0: i32) -> (i32, i32) {
    %c0_i32 = arith.constant 0 : i32
    %c0_i32_0 = arith.constant 0 : i32
    %c0_i32_1 = arith.constant 0 : i32
    return %c0_i32, %c0_i32_0 : i32, i32
  }
  func.func @transform_6(%arg0: i32) -> (i32, i32) {
    %c0_i32 = arith.constant 0 : i32
    %c0_i32_0 = arith.constant 0 : i32
    %c0_i32_1 = arith.constant 0 : i32
    return %c0_i32, %c0_i32_0 : i32, i32
  }
  func.func @transform_7(%arg0: i32) -> (i32, i32) {
    %c0_i32 = arith.constant 0 : i32
    %c0_i32_0 = arith.constant 0 : i32
    return %c0_i32, %arg0 : i32, i32
  }
}

</mosaic_0001>

<bundles_post_ra>
// kernel: tpu_custom_call.1
= control target key start
LH: loop header
LB: loop body
LE: loop exit
PB: predicated region body
PF: predicated region fallthrough
CT: control target
= control target key end

     0   :  { %12 = vsyncpa [#allocation3], 0  ;;  %s463_s0 = inlined_call_operand.vmem [shape: f32[8,32], index: 0, kind: input, shape index: {}]   ;;  %s464_s1 = inlined_call_operand.hbm [shape: f32[32,128], index: 1, kind: input, shape index: {}]   ;;  %s465_s2 = inlined_call_operand.vmem [shape: f32[1,128], index: 2, kind: input, shape index: {}]   ;;  %s466_s3 = inlined_call_operand.hbm [shape: f32[128,128], index: 3, kind: input, shape index: {}]   ;;  %s467_s4 = inlined_call_operand.vmem [shape: f32[1,128], index: 4, kind: input, shape index: {}]   ;;  %s468_s5 = inlined_call_operand.hbm [shape: f32[8,128], index: 5, kind: input, shape index: {}]   ;;  %s469_s6 = inlined_call_operand.vmem [shape: f32[8,1], index: 6, kind: input, shape index: {}]   ;;  %s470_s7 = inlined_call_operand.hbm [shape: f32[8,8], index: 7, kind: output, shape index: {}]  }
   0x1   :  { %13 = vsyncpa [#allocation6], 0 }
   0x2   :  { %14 = vsyncpa [#allocation4], 0  ;;  %s36_s26 = sshll.u32 %s466_s3, 4  ;;  %s388_s27 = smov [#allocation5]   ;;  %s37_s26 = int_to_ptr.hbm [resolvable:$true] %s36_s26 }
   0x3   :  { %s38_s28 = sshll.u32 %s388_s27, 4  ;;  %s21_s8 = sshll.u32 %s464_s1, 4  ;;  %s39_s28 = int_to_ptr.vmem [resolvable:$true] %s38_s28  ;;  %s22_s8 = int_to_ptr.hbm [resolvable:$true] %s21_s8 }
   0x4   :  { %s389_s9 = smov 128   ;;  %s390_s10 = smov 8  }
   0x5   :  { %44 = dma.hbm_to_vmem [thread:$0]  %s37_s26, 2048, %s39_s28, [#allocation6], %s389_s9, %s389_s9, %s390_s10  }
   0x6   :  { %s391_s11 = smov [#allocation2]   ;;  %s52_s15 = sshll.u32 %s468_s5, 4  ;;  %s53_s15 = int_to_ptr.hbm [resolvable:$true] %s52_s15 }
   0x7   :  { %s23_s12 = sshll.u32 %s391_s11, 4  ;;  %s392_s3 = smov [#allocation7]   ;;  %s24_s12 = int_to_ptr.vmem [resolvable:$true] %s23_s12 }
   0x8   :  { %29 = dma.hbm_to_vmem [thread:$0]  %s22_s8, 512, %s24_s12, [#allocation3], %s389_s9, %s389_s9, %s390_s10  }
   0x9   :  { %s54_s16 = sshll.u32 %s392_s3, 4  ;;  %s55_s16 = int_to_ptr.vmem [resolvable:$true] %s54_s16 }
   0xa   :  { %57 = dma.hbm_to_vmem [thread:$0]  %s53_s15, 128, %s55_s16, [#allocation6]  }
   0xb   :  { %382 = dma.done.wait [#allocation3], 512  }
   0xc   :  { %383 = vsyncadd [#allocation3], 4294966784 }
   0xd   :  { %384 = dma.done.wait [#allocation6], 2176  }
   0xe   :  { %385 = vsyncadd [#allocation6], 4294965120  ;;  %vm74_vm0 = vcmask 261120   ;;  %v73_v0 = vld [vmem:[%s463_s0] sm:$0xff]  ;;  %v393_v2 = vmov 32.0   ;;  %v107_v14 = vld [vmem:[#allocation2 + $0x10] sm:$0xff] }
   0xf   :  { %v75_v1 = vsel %vm74_vm0, %v73_v0, 0.0  ;;  %276 = vrcp.f32 %v393_v2  ;;  %v108_v15 = vld [vmem:[#allocation2 + $0x18] sm:$0xff]  ;;  %v105_v17 = vld [vmem:[#allocation2] sm:$0xff]  ;;  %v106_v18 = vld [vmem:[#allocation2 + $0x8] sm:$0xff]  ;;  %s253_s23 = sshll.u32 %s470_s7, 4  ;;  %vm244_vm11 = vcmask 64512   ;;  %s254_s23 = int_to_ptr.hbm [resolvable:$true] %s253_s23 }
  0x10   :  { %76 = vadd.xlane.f32.xlu0 %v75_v1  ;;  %v110_v16 = vpack.c.bf16 %v108_v15, %v107_v14  ;;  %v109_v19 = vpack.c.bf16 %v106_v18, %v105_v17  ;;  %v274_v32 = vld [vmem:[%s465_s2] ss:$0 sm:$0xff]  ;;  %v170_v38 = vld [vmem:[#allocation5 + $0x70] sm:$0xff]  ;;  %v171_v39 = vld [vmem:[#allocation5 + $0x78] sm:$0xff] }
  0x11   :  { %v179_v40 = vpack.c.bf16 %v171_v39, %v170_v38  ;;  %v168_v41 = vld [vmem:[#allocation5 + $0x60] sm:$0xff]  ;;  %v169_v42 = vld [vmem:[#allocation5 + $0x68] sm:$0xff]  ;;  %v166_v44 = vld [vmem:[#allocation5 + $0x50] sm:$0xff] }
  0x12   :  { %124 = vmatpush.bf16.msra.mxu0 %v110_v16  ;;  %v178_v43 = vpack.c.bf16 %v169_v42, %v168_v41  ;;  %v167_v45 = vld [vmem:[#allocation5 + $0x58] sm:$0xff]  ;;  %v164_v47 = vld [vmem:[#allocation5 + $0x40] sm:$0xff]  ;;  %v165_v48 = vld [vmem:[#allocation5 + $0x48] sm:$0xff] }
  0x13   :  { %184 = vmatpush.bf16.msra.mxu1 %v179_v40  ;;  %v177_v46 = vpack.c.bf16 %v167_v45, %v166_v44  ;;  %v176_v49 = vpack.c.bf16 %v165_v48, %v164_v47  ;;  %v162_v50 = vld [vmem:[#allocation5 + $0x30] sm:$0xff]  ;;  %v163_v51 = vld [vmem:[#allocation5 + $0x38] sm:$0xff]  ;;  %v160_v53 = vld [vmem:[#allocation5 + $0x20] sm:$0xff] }
  0x14   :  { %v175_v52 = vpack.c.bf16 %v163_v51, %v162_v50  ;;  %v161_v54 = vld [vmem:[#allocation5 + $0x28] sm:$0xff]  ;;  %v158_v56 = vld [vmem:[#allocation5 + $0x10] sm:$0xff]  ;;  %v159_v57 = vld [vmem:[#allocation5 + $0x18] sm:$0xff] }
  0x15   :  { %v277_v3 = vpop.eup %276  ;;  %v174_v55 = vpack.c.bf16 %v161_v54, %v160_v53  ;;  %v173_v58 = vpack.c.bf16 %v159_v57, %v158_v56  ;;  %v156_v59 = vld [vmem:[#allocation5] sm:$0xff]  ;;  %v157_v60 = vld [vmem:[#allocation5 + $0x8] sm:$0xff] }
  0x16   :  { %v79_v4 = vmul.f32 32.0, %v277_v3  ;;  %vm83_vm1 = vweird.f32 %v277_v3  ;;  %125 = vmatpush.bf16.msra.mxu0 %v109_v19  ;;  %v172_v62 = vpack.c.bf16 %v157_v60, %v156_v59  ;;  %v275_v16 = vld [vmem:[%s467_s4] ss:$0 sm:$0xff]  ;;  %s395_s4 = smov [#allocation8]  }
  0x17   :  { %185 = vmatpush.bf16.msra.mxu1 %v178_v43  ;;  %v221_v42 = vld [vmem:[#allocation7] sm:$0xff] }
  0x18   :  { %v80_v5 = vsub.f32 1.0, %v79_v4  ;;  %v222_v43 = vpack.c.bf16 %v221_v42, %v221_v42 }
  0x1a   :  { %v81_v6 = vmul.f32 %v277_v3, %v80_v5 }
  0x1b   :  { %186 = vmatpush.bf16.msra.mxu1 %v177_v46 }
  0x1c   :  { %v82_v7 = vadd.f32 %v277_v3, %v81_v6 }
  0x1e   :  { %v84_v8 = vsel %vm83_vm1, %v277_v3, %v82_v7 }
  0x1f   :  { %187 = vmatpush.bf16.msra.mxu1 %v176_v49 }
  0x23   :  { %188 = vmatpush.bf16.msra.mxu1 %v175_v52 }
  0x27   :  { %189 = vmatpush.bf16.msra.mxu1 %v174_v55 }
  0x2b   :  { %190 = vmatpush.bf16.msra.mxu1 %v173_v58 }
  0x2f   :  { %191 = vmatpush.bf16.msra.mxu1 %v172_v62 }
  0x83   :  { %v77_v9 = vpop.xlane.xlu0 %76 }
  0x84   :  { %v85_v10 = vmul.f32 %v84_v8, %v77_v9 }
  0x86   :  { %v86_v11 = vsub.f32 %v73_v0, %v85_v10 }
  0x88   :  { %v87_v12 = vmul.f32 %v86_v11, %v86_v11 }
  0x8a   :  { %v88_v13 = vsel %vm74_vm0, %v87_v12, 0.0 }
  0x8b   :  { %89 = vadd.xlane.f32.xlu0 %v88_v13 }
  0xfe   :  { %v90_v20 = vpop.xlane.xlu0 %89 }
  0xff   :  { %v91_v21 = vmul.f32 %v90_v20, %v84_v8 }
 0x101   :  { %v92_v22 = vadd.f32 1e-05, %v91_v21 }
 0x103   :  { %278 = vrsqrt.f32 %v92_v22  ;;  %vm99_vm3 = vweird.f32 %v92_v22 }
 0x109   :  { %v279_v23 = vpop.eup %278 }
 0x10a   :  { %v94_v24 = vmul.f32 %v279_v23, %v92_v22  ;;  %vm100_vm2 = vweird.f32 %v279_v23 }
 0x10b   :  { %vm101_vm4 = vmor %vm99_vm3, %vm100_vm2 }
 0x10c   :  { %v95_v25 = vmul.f32 %v279_v23, %v94_v24 }
 0x10e   :  { %v96_v26 = vmul.f32 0.5, %v95_v25 }
 0x110   :  { %v97_v27 = vsub.f32 1.5, %v96_v26 }
 0x112   :  { %v98_v28 = vmul.f32 %v279_v23, %v97_v27 }
 0x114   :  { %v102_v29 = vsel %vm101_vm4, %v279_v23, %v98_v28 }
 0x115   :  { %v103_v30 = vmul.f32 %v102_v29, %v86_v11  ;;  %v224_v29 = vld [vmem:[%s469_s6] sm:$0xff]  ;;  %s251_s6 = sshll.u32 %s395_s4, 4  ;;  %s252_s6 = int_to_ptr.vmem [resolvable:$true] %s251_s6 }
 0x117   :  { %v104_v31 = vpack.c.bf16 %v103_v30, %v103_v30 }
 0x119   :  { %264 = vmatmul.msk.bf16.vlgmr.msra.gmra.mxu0 %vm74_vm0, %v104_v31  ;;  %v394_v31 = vmov 0  }
 0x11a   :  { %273 = vset.pattern.permute.xlu0 %v394_v31 }
 0x11b   :  { %227 = vperm.xlu0 %273, %v224_v29  }
 0x18d   :  { %v228_v44 = vpop.permute.xlu0 %227 }
 0x196   :  { %v127_v33 = vpop.f32.mrf.mxu0 }
 0x197   :  { %v128_v34 = vadd.f32 %v274_v32, %v127_v33 }
 0x199   :  { %v131_v35 = vmax.f32 %v128_v34, 0.0 }
 0x19b   :  { %132 = vadd.xlane.f32.xlu1 %v131_v35  ;;  %v134_v37 = vmul.f32 %v131_v35, %v131_v35 }
 0x19e   :  { %v129_v36 = vpop.f32.mrf.mxu0 }
 0x1a3   :  { %135 = vadd.xlane.f32.xlu1 %v134_v37 }
 0x20e   :  { %v133_v61 = vpop.xlane.xlu1 %132 }
 0x20f   :  { %v137_v63 = vmul.f32 0.0078125, %v133_v61 }
 0x211   :  { %v139_v1 = vmul.f32 %v137_v63, %v137_v63  ;;  %v142_v12 = vsub.f32 %v131_v35, %v137_v63 }
 0x216   :  { %v136_v0 = vpop.xlane.xlu1 %135 }
 0x217   :  { %v138_v2 = vmul.f32 0.0078125, %v136_v0 }
 0x219   :  { %v140_v3 = vsub.f32 %v138_v2, %v139_v1 }
 0x21b   :  { %v141_v4 = vmax.f32 %v140_v3, 0.0 }
 0x21d   :  { %v143_v5 = vadd.f32 1e-05, %v141_v4 }
 0x21f   :  { %280 = vrsqrt.f32 %v143_v5  ;;  %vm150_vm6 = vweird.f32 %v143_v5 }
 0x225   :  { %v281_v6 = vpop.eup %280 }
 0x226   :  { %v145_v7 = vmul.f32 %v281_v6, %v143_v5  ;;  %vm151_vm5 = vweird.f32 %v281_v6 }
 0x227   :  { %vm152_vm7 = vmor %vm150_vm6, %vm151_vm5 }
 0x228   :  { %v146_v8 = vmul.f32 %v281_v6, %v145_v7 }
 0x22a   :  { %v147_v9 = vmul.f32 0.5, %v146_v8 }
 0x22c   :  { %v148_v10 = vsub.f32 1.5, %v147_v9 }
 0x22e   :  { %v149_v11 = vmul.f32 %v281_v6, %v148_v10 }
 0x230   :  { %v153_v13 = vsel %vm152_vm7, %v281_v6, %v149_v11 }
 0x231   :  { %v154_v14 = vmul.f32 %v153_v13, %v142_v12 }
 0x233   :  { %v155_v15 = vpack.c.bf16 %v154_v14, %v154_v14 }
 0x235   :  { %192 = vmatmul.bf16.vlgmr.msra.gmra.mxu1 %v155_v15 }
 0x2b2   :  { %v193_v17 = vpop.f32.mrf.mxu1 }
 0x2b3   :  { %v194_v18 = vadd.f32 %v275_v16, %v193_v17 }
 0x2b5   :  { %v197_v19 = vmax.f32 %v194_v18, 0.0 }
 0x2b7   :  { %198 = vadd.xlane.f32.xlu2 %v197_v19  ;;  %v200_v21 = vmul.f32 %v197_v19, %v197_v19 }
 0x2ba   :  { %v195_v20 = vpop.f32.mrf.mxu1 }
 0x2bf   :  { %201 = vadd.xlane.f32.xlu2 %v200_v21 }
 0x32a   :  { %v199_v22 = vpop.xlane.xlu2 %198 }
 0x32b   :  { %v203_v23 = vmul.f32 0.0078125, %v199_v22 }
 0x32d   :  { %v205_v25 = vmul.f32 %v203_v23, %v203_v23  ;;  %v208_v38 = vsub.f32 %v197_v19, %v203_v23 }
 0x332   :  { %v202_v24 = vpop.xlane.xlu2 %201 }
 0x333   :  { %v204_v26 = vmul.f32 0.0078125, %v202_v24 }
 0x335   :  { %v206_v27 = vsub.f32 %v204_v26, %v205_v25 }
 0x337   :  { %v207_v28 = vmax.f32 %v206_v27, 0.0 }
 0x339   :  { %v209_v30 = vadd.f32 1e-05, %v207_v28 }
 0x33b   :  { %282 = vrsqrt.f32 %v209_v30  ;;  %vm216_vm9 = vweird.f32 %v209_v30 }
 0x341   :  { %v283_v32 = vpop.eup %282 }
 0x342   :  { %v211_v33 = vmul.f32 %v283_v32, %v209_v30  ;;  %vm217_vm8 = vweird.f32 %v283_v32 }
 0x343   :  { %vm218_vm10 = vmor %vm216_vm9, %vm217_vm8 }
 0x344   :  { %v212_v34 = vmul.f32 %v283_v32, %v211_v33 }
 0x346   :  { %v213_v35 = vmul.f32 0.5, %v212_v34 }
 0x348   :  { %v214_v36 = vsub.f32 1.5, %v213_v35 }
 0x34a   :  { %v215_v37 = vmul.f32 %v283_v32, %v214_v36 }
 0x34c   :  { %v219_v39 = vsel %vm218_vm10, %v283_v32, %v215_v37 }
 0x34d   :  { %v220_v40 = vmul.f32 %v219_v39, %v208_v38 }
 0x34f   :  { %v223_v41 = vpack.c.bf16 %v220_v40, %v220_v40 }
 0x351   :  { %237 = vmatpush.bf16.xpose.msra.mxu2 %v223_v41 }
 0x358   :  { %238 = vmatmul.bf16.vlgmr.msra.gmra.mxu2 %v222_v43 }
 0x3db   :  { %v239_v45 = vpop.f32.mrf.mxu2 }
 0x3dc   :  { %v240_v46 = vadd.f32 %v239_v45, %v228_v44 }
 0x3de   :  { %284 = vtanh.f32 %v240_v46 }
 0x3e3   :  { %v241_v47 = vpop.f32.mrf.mxu2 }
 0x3e4   :  { %v285_v48 = vpop.eup %284 }
 0x3e5   :  { %245 = vst.msk [vmem:[#allocation8] sm:$0xff] %vm244_vm11, %v285_v48 }
 0x3e6   :  { %256 = dma.vmem_to_hbm [thread:$0]  %s252_s6, 128, %s254_s23, [#allocation4]  }
 0x3e7   :  { %386 = dma.done.wait [#allocation4], 128  }
 0x3e8   :  { %387 = vsyncadd [#allocation4], 4294967168 }
 0x3e9   :  { %261 = vsyncpa [#allocation3], 1 }
 0x3ea   :  { %262 = vsyncpa [#allocation6], 1 }
 0x3eb   :  { %263 = vsyncpa [#allocation4], 1 }

</bundles_post_ra>
